<compile_context>
chip_gen: v7x
topology: tpu7x:2x2x1
jax: 0.10.0
libtpu: 0.0.40
codegen_flags: <defaults>
</compile_context>

<pallas_src>
import functools

import jax
import jax.numpy as jnp
from jax.experimental import pallas as pl
from jax.experimental.pallas import tpu as pltpu


def _round_up(x: int, m: int) -> int:
    return ((x + m - 1) // m) * m


@functools.lru_cache(maxsize=None)
def _physical_vmem_bytes() -> int:
    """Per-TensorCore VMEM capacity; conservative 64 MiB (v7x) if unknown."""
    try:
        info = pltpu.get_tpu_info()
        for attr in ("vmem_capacity_bytes", "vmem_bytes", "vmem_size_bytes"):
            v = getattr(info, attr, None)
            if v:
                return int(v)
    except Exception:
        pass
    return 64 * 1024 * 1024


def _pick_tile(dim: int, grain: int, cap: int):
    """Return (tile, padded_dim). Pad only to `grain`; tile divides padded_dim."""
    dp = _round_up(dim, grain)
    if dp <= cap:
        return dp, dp  # single block; padded only if the dim was unaligned
    best = grain
    for t in range(grain, cap + 1, grain):
        if dp % t == 0:
            best = t
    return best, dp


def _vmem_tile_bytes(tm: int, tn: int, tk: int, in_itemsize: int) -> int:
    dbuf = 2  # double-buffered pipeline buffers
    stream = dbuf * (tm * tk + tk * tn) * in_itemsize + dbuf * tm * tn * 4
    temps = (tm * tk + tk * tn) * 2 + tm * tn * 4  # in-kernel bf16 casts + dot result
    return stream + temps


# (cap_tm, cap_tn, cap_tk) candidates, largest first.
_CAP_LADDER = (
    (1024, 1024, 4096),
    (512, 1024, 4096),
    (1024, 512, 4096),
    (512, 512, 2048),
    (512, 512, 1024),
    (256, 512, 1024),
    (256, 256, 1024),
    (256, 256, 512),
    (128, 256, 512),
    (128, 128, 512),
    (128, 128, 256),
    (8, 128, 128),
)


def _select_tiles(M: int, K: int, N: int, budget_bytes: int, in_itemsize: int):
    tiles = None
    for cap_m, cap_n, cap_k in _CAP_LADDER:
        tm, Mp = _pick_tile(M, 8, cap_m)
        tn, Np = _pick_tile(N, 128, cap_n)
        tk, Kp = _pick_tile(K, 128, cap_k)
        tiles = (tm, tn, tk, Mp, Np, Kp)
        if _vmem_tile_bytes(tm, tn, tk, in_itemsize) <= budget_bytes:
            return tiles
    return tiles  # smallest ladder entry as a fallback


def _linear_kernel(x_ref, w_ref, b_ref, o_ref, *, compute_dtype):
    k = pl.program_id(2)

    @pl.when(k == 0)
    def _init():
        # Fold the bias into the accumulator init: no epilogue add, no scratch.
        o_ref[...] = jnp.broadcast_to(b_ref[...], o_ref.shape).astype(o_ref.dtype)

    x = x_ref[...]
    w = w_ref[...]
    if compute_dtype != x.dtype:
        # Cast on the VPU right before the MXU matmul; accumulation stays f32.
        x = x.astype(compute_dtype)
        w = w.astype(compute_dtype)
    o_ref[...] += jnp.dot(x, w, preferred_element_type=jnp.float32)


@functools.partial(jax.jit, static_argnames=("use_bf16_mxu",))
def linear_forward(x, weight, bias, *, use_bf16_mxu=True):
    """Pallas equivalent of LinearLayer.forward.

    x:      (M, K) float32
    weight: (K, N) float32
    bias:   (N,)   float32
    returns (out, weight, bias) with out = x @ weight + bias, shape (M, N)
    """
    M, K = x.shape
    K2, N = weight.shape
    assert K == K2, "input_size mismatch"
    assert bias.shape == (N,), "output_size mismatch"

    # f32 accumulation happens directly in the output block (module is f32).
    x32 = x.astype(jnp.float32)
    w32 = weight.astype(jnp.float32)
    b32 = bias.astype(jnp.float32)

    phys_vmem = _physical_vmem_bytes()
    vmem_limit = (phys_vmem * 3) // 4          # ~96 MiB v5e/v6e, ~48 MiB v7x
    budget = int(vmem_limit * 0.9)             # headroom for sems/metadata

    tm, tn, tk, Mp, Np, Kp = _select_tiles(M, K, N, budget, in_itemsize=4)

    # Pad only when unaligned (hardware grain 8 / 128); tiles divide padded dims.
    if (Mp, Kp) != (M, K):
        x32 = jnp.pad(x32, ((0, Mp - M), (0, Kp - K)))
    if (Kp, Np) != (K, N):
        w32 = jnp.pad(w32, ((0, Kp - K), (0, Np - N)))
    b2 = b32.reshape(1, N)
    if Np != N:
        b2 = jnp.pad(b2, ((0, 0), (0, Np - N)))

    grid = (Mp // tm, Np // tn, Kp // tk)
    gm, gn, gk = grid

    # Honest traffic estimate: x re-streams once per j tile unless the whole K
    # panel is resident (gk == 1), in which case its block index is constant
    # across j and it streams exactly once; weight re-streams once per i tile.
    x_passes = gn if gk > 1 else 1
    flops = 2 * Mp * Np * Kp
    bytes_accessed = (
        Mp * Kp * 4 * x_passes + Kp * Np * 4 * gm + Np * 4 + Mp * Np * 4
    )

    kernel = functools.partial(
        _linear_kernel,
        compute_dtype=jnp.bfloat16 if use_bf16_mxu else jnp.float32,
    )

    out_padded = pl.pallas_call(
        kernel,
        out_shape=jax.ShapeDtypeStruct((Mp, Np), jnp.float32),
        grid_spec=pltpu.PrefetchScalarGridSpec(
            num_scalar_prefetch=0,
            grid=grid,
            in_specs=[
                pl.BlockSpec((tm, tk), lambda i, j, k: (i, k)),   # x tile
                pl.BlockSpec((tk, tn), lambda i, j, k: (k, j)),   # weight tile
                pl.BlockSpec((1, tn), lambda i, j, k: (0, j)),    # bias tile
            ],
            out_specs=pl.BlockSpec((tm, tn), lambda i, j, k: (i, j)),
        ),
        compiler_params=pltpu.CompilerParams(
            dimension_semantics=("parallel", "parallel", "arbitrary"),
            vmem_limit_bytes=int(vmem_limit),
        ),
        cost_estimate=pl.CostEstimate(
            flops=flops, transcendentals=0, bytes_accessed=bytes_accessed
        ),
    )(x32, w32, b2)

    out = out_padded
    if (Mp, Np) != (M, N):
        out = out[:M, :N]
    # Module returns the parameters alongside the output.
    return out, weight, bias


if __name__ == "__main__":
    key = jax.random.PRNGKey(0)
    kx, kw, kb = jax.random.split(key, 3)

    # Small shapes consistent with the module: batch=8, input_size=32, output_size=16.
    M, K, N = 8, 32, 16
    x = jax.random.normal(kx, (M, K), dtype=jnp.float32)
    weight = jax.random.normal(kw, (K, N), dtype=jnp.float32) * 0.02
    bias = jax.random.normal(kb, (N,), dtype=jnp.float32) * 0.02

    out, w_out, b_out = linear_forward(x, weight, bias)
    jax.block_until_ready(out)

    ref_bf16 = (
        x.astype(jnp.bfloat16).astype(jnp.float32)
        @ weight.astype(jnp.bfloat16).astype(jnp.float32)
        + bias
    )
    ref_f32 = x @ weight + bias
    assert out.shape == (M, N)
    assert jnp.allclose(out, ref_bf16, atol=1e-2, rtol=1e-2)
    assert jnp.allclose(out, ref_f32, atol=5e-2, rtol=5e-2)
    assert jnp.array_equal(w_out, weight)
    assert jnp.array_equal(b_out, bias)

    # Medium shape: aligned dims, full-K panel (single k step), multi (i, j) tiles.
    M2, K2, N2 = 384, 1024, 640
    x2 = jax.random.normal(kx, (M2, K2), dtype=jnp.float32)
    w2 = jax.random.normal(kw, (K2, N2), dtype=jnp.float32) * 0.02
    b2 = jax.random.normal(kb, (N2,), dtype=jnp.float32) * 0.02
    out2, _, _ = linear_forward(x2, w2, b2)
    jax.block_until_ready(out2)
    ref2 = (
        x2.astype(jnp.bfloat16).astype(jnp.float32)
        @ w2.astype(jnp.bfloat16).astype(jnp.float32)
        + b2
    )
    assert out2.shape == (M2, N2)
    assert jnp.allclose(out2, ref2, atol=2e-2, rtol=2e-2)

    # Large shape: exercises the multi-step (i, j, k) grid with k-accumulation
    # into the resident output block on every TPU generation.
    M3, K3, N3 = 1536, 8192, 2048
    x3 = jax.random.normal(kx, (M3, K3), dtype=jnp.float32)
    w3 = jax.random.normal(kw, (K3, N3), dtype=jnp.float32) * 0.02
    b3 = jax.random.normal(kb, (N3,), dtype=jnp.float32) * 0.02
    out3, _, _ = linear_forward(x3, w3, b3)
    jax.block_until_ready(out3)
    ref3 = (
        x3.astype(jnp.bfloat16).astype(jnp.float32)
        @ w3.astype(jnp.bfloat16).astype(jnp.float32)
        + b3
    )
    assert out3.shape == (M3, N3)
    assert jnp.allclose(out3, ref3, atol=3e-2, rtol=3e-2)

    print("KERNEL_OK")
</pallas_src>

<mosaic_0001>
module attributes {stable_mosaic.version = 11 : i64} {
  func.func @_linear_kernel(%arg0: i32, %arg1: i32, %arg2: i32, %arg3: memref<8x128xf32, #tpu.memory_space<vmem>>, %arg4: memref<128x128xf32, #tpu.memory_space<vmem>>, %arg5: memref<1x128xf32, #tpu.memory_space<vmem>>, %arg6: memref<8x128xf32, #tpu.memory_space<vmem>>) attributes {dimension_semantics = [#tpu.dimension_semantics<parallel>, #tpu.dimension_semantics<parallel>, #tpu.dimension_semantics<arbitrary>], iteration_bounds = array<i64: 1, 1, 1>, scalar_prefetch = 0 : i64, scratch_operands = 0 : i64, tpu.core_type = #tpu.core_type<tc>, window_params = [{transform_indices = @transform_0, window_bounds = array<i64: 8, 128>}, {transform_indices = @transform_1, window_bounds = array<i64: 128, 128>}, {transform_indices = @transform_2, window_bounds = array<i64: 1, 128>}, {transform_indices = @transform_3, window_bounds = array<i64: 8, 128>}]} {
    %c0_i32 = arith.constant 0 : i32
    %0 = arith.cmpi eq, %arg2, %c0_i32 : i32
    %1 = arith.extui %0 : i1 to i32
    %c0_i32_0 = arith.constant 0 : i32
    %2 = arith.cmpi ne, %1, %c0_i32_0 : i32
    scf.if %2 {
      %c0_8 = arith.constant 0 : index
      %c0_9 = arith.constant 0 : index
      %11 = vector.load %arg5[%c0_8, %c0_9] : memref<1x128xf32, #tpu.memory_space<vmem>>, vector<1x128xf32>
      %12 = vector.shape_cast %11 : vector<1x128xf32> to vector<1x128xf32>
      %13 = vector.broadcast %12 : vector<1x128xf32> to vector<8x128xf32>
      %c0_10 = arith.constant 0 : index
      %c0_11 = arith.constant 0 : index
      %14 = vector.load %arg6[%c0_10, %c0_11] : memref<8x128xf32, #tpu.memory_space<vmem>>, vector<8x128xf32>
      tpu.vector_store %arg6[%c0_10, %c0_11], %13 {strides = array<i32>} : memref<8x128xf32, #tpu.memory_space<vmem>>, vector<8x128xf32>,
    } else {
    }
    %c0 = arith.constant 0 : index
    %c0_1 = arith.constant 0 : index
    %3 = vector.load %arg3[%c0, %c0_1] : memref<8x128xf32, #tpu.memory_space<vmem>>, vector<8x128xf32>
    %c0_2 = arith.constant 0 : index
    %c0_3 = arith.constant 0 : index
    %4 = vector.load %arg4[%c0_2, %c0_3] : memref<128x128xf32, #tpu.memory_space<vmem>>, vector<128x128xf32>
    %5 = arith.truncf %3 : vector<8x128xf32> to vector<8x128xbf16>
    %6 = arith.truncf %4 : vector<128x128xf32> to vector<128x128xbf16>
    %c0_4 = arith.constant 0 : index
    %c0_5 = arith.constant 0 : index
    %7 = vector.load %arg6[%c0_4, %c0_5] : memref<8x128xf32, #tpu.memory_space<vmem>>, vector<8x128xf32>
    %cst = arith.constant dense<0.000000e+00> : vector<8x128xf32>
    %8 = tpu.matmul %5, %6, %cst {dimension_numbers = #tpu.dot_dimension_numbers<[1], [0], [0], [1], [0, 0, 1, 1], [], []>} : vector<8x128xbf16>, vector<128x128xbf16>, vector<8x128xf32> -> vector<8x128xf32>
    %9 = arith.addf %7, %8 : vector<8x128xf32>
    %c0_6 = arith.constant 0 : index
    %c0_7 = arith.constant 0 : index
    %10 = vector.load %arg6[%c0_6, %c0_7] : memref<8x128xf32, #tpu.memory_space<vmem>>, vector<8x128xf32>
    tpu.vector_store %arg6[%c0_6, %c0_7], %9 {strides = array<i32>} : memref<8x128xf32, #tpu.memory_space<vmem>>, vector<8x128xf32>,
    return
  }
  func.func @transform_0(%arg0: i32, %arg1: i32, %arg2: i32) -> (i32, i32) {
    %c0_i32 = arith.constant 0 : i32
    return %arg0, %arg2 : i32, i32
  }
  func.func @transform_1(%arg0: i32, %arg1: i32, %arg2: i32) -> (i32, i32) {
    %c0_i32 = arith.constant 0 : i32
    return %arg2, %arg1 : i32, i32
  }
  func.func @transform_2(%arg0: i32, %arg1: i32, %arg2: i32) -> (i32, i32) {
    %c0_i32 = arith.constant 0 : i32
    %c0_i32_0 = arith.constant 0 : i32
    return %c0_i32, %arg1 : i32, i32
  }
  func.func @transform_3(%arg0: i32, %arg1: i32, %arg2: i32) -> (i32, i32) {
    %c0_i32 = arith.constant 0 : i32
    return %arg0, %arg1 : i32, i32
  }
}

</mosaic_0001>

<bundles_post_ra>
// kernel: linear_forward.1
= control target key start
LH: loop header
LB: loop body
LE: loop exit
PB: predicated region body
PF: predicated region fallthrough
CT: control target
= control target key end

     0   :  { %v168_v3 = vmov 0.0   ;;  %vm169_vm0 = vmmov 0   ;;  %s257_s0 = inlined_call_operand.vmem [shape: f32[8,128], index: 0, kind: input, shape index: {}]   ;;  %s258_s1 = inlined_call_operand.vmem [shape: f32[128,128], index: 1, kind: input, shape index: {}]   ;;  %s259_s2 = inlined_call_operand.vmem [shape: f32[1,128], index: 2, kind: input, shape index: {}]   ;;  %s260_s3 = inlined_call_operand.hbm [shape: f32[8,128], index: 3, kind: output, shape index: {}]  }
   0x1   :  { %v29_v0 = vld [vmem:[%s258_s1] sm:$0xff]  ;;  %v30_v1 = vld [vmem:[%s258_s1 + $0x8] sm:$0xff]  ;;  %v31_v2 = vld [vmem:[%s258_s1 + $0x10] sm:$0xff]  ;;  %121 = vmatprep.subr.bf16.mxu0 %v168_v3  ;;  %137 = vmatprep.mubr.msk.bf16.mxu0 %vm169_vm0, %v168_v3 }
   0x2   :  { %v46_v4 = vpack.c.bf16 %v30_v1, %v29_v0  ;;  %v32_v5 = vld [vmem:[%s258_s1 + $0x18] sm:$0xff]  ;;  %v33_v7 = vld [vmem:[%s258_s1 + $0x20] sm:$0xff]  ;;  %v34_v8 = vld [vmem:[%s258_s1 + $0x28] sm:$0xff] }
   0x3   :  { %v47_v6 = vpack.c.bf16 %v32_v5, %v31_v2 }
   0x4   :  { %122 = vmatpush3.bf16.msra.mxu0 %v46_v4 }
   0x5   :  { %123 = vmatprep.subr.bf16.mxu0 %v168_v3 }
   0x6   :  { %8 = vsyncpa [#allocation3], 0  ;;  %v48_v9 = vpack.c.bf16 %v34_v8, %v33_v7  ;;  %v35_v10 = vld [vmem:[%s258_s1 + $0x30] sm:$0xff]  ;;  %v36_v11 = vld [vmem:[%s258_s1 + $0x38] sm:$0xff]  ;;  %s170_s21 = smov [#allocation2]  }
   0x7   :  { %v49_v12 = vpack.c.bf16 %v36_v11, %v35_v10  ;;  %v37_v13 = vld [vmem:[%s258_s1 + $0x40] sm:$0xff]  ;;  %v38_v14 = vld [vmem:[%s258_s1 + $0x48] sm:$0xff]  ;;  %v39_v16 = vld [vmem:[%s258_s1 + $0x50] sm:$0xff]  ;;  %s103_s22 = sshll.u32 %s170_s21, 4  ;;  %s104_s22 = int_to_ptr.vmem [resolvable:$true] %s103_s22 }
   0x8   :  { %124 = vmatpush3.bf16.msra.mxu0 %v47_v6  ;;  %v50_v15 = vpack.c.bf16 %v38_v14, %v37_v13  ;;  %v40_v17 = vld [vmem:[%s258_s1 + $0x58] sm:$0xff]  ;;  %v41_v19 = vld [vmem:[%s258_s1 + $0x60] sm:$0xff]  ;;  %v42_v20 = vld [vmem:[%s258_s1 + $0x68] sm:$0xff]  ;;  %p149_p1 = scmp.lt.s32.totalorder %s104_s22, %s104_s22 }
   0x9   :  { %125 = vmatprep.subr.bf16.mxu0 %v168_v3  ;;  %v51_v18 = vpack.c.bf16 %v40_v17, %v39_v16  ;;  %v52_v21 = vpack.c.bf16 %v42_v20, %v41_v19  ;;  %v43_v22 = vld [vmem:[%s258_s1 + $0x70] sm:$0xff]  ;;  %v44_v23 = vld [vmem:[%s258_s1 + $0x78] sm:$0xff]  ;;  %v28_v25 = vld [vmem:[%s257_s0] sm:$0xff]  ;;  %s144_s1 = scalar_lea.vmem %s104_s22, 128 }
   0xa   :  { %v53_v24 = vpack.c.bf16 %v44_v23, %v43_v22  ;;  %v45_v26 = vpack.c.bf16 %v28_v25, %v28_v25  ;;  %v111_v27 = vld [vmem:[%s259_s2] ss:$0 sm:$0xff]  ;;  %p145_p0 = scmp.ne.s32.totalorder %s104_s22, %s144_s1  ;;  %p150_p2 = scmp.lt.s32.totalorder %s144_s1, %s144_s1 }
   0xc   :  { %126 = vmatpush3.bf16.msra.mxu0 %v48_v9  ;;  %p151_p3 = por %p150_p2, %p149_p1 }
   0xd   :  { %127 = vmatprep.subr.bf16.mxu0 %v168_v3 }
   0xe   :  { %p152_p4 = pnand %p151_p3, %p145_p0 }
  0x10   :  { %128 = vmatpush3.bf16.msra.mxu0 %v49_v12 }
  0x11   :  { %129 = vmatprep.subr.bf16.mxu0 %v168_v3 }
  0x14   :  { %130 = vmatpush3.bf16.msra.mxu0 %v50_v15 }
  0x15   :  { %131 = vmatprep.subr.bf16.mxu0 %v168_v3 }
  0x18   :  { %132 = vmatpush3.bf16.msra.mxu0 %v51_v18 }
  0x19   :  { %133 = vmatprep.subr.bf16.mxu0 %v168_v3 }
  0x1c   :  { %134 = vmatpush3.bf16.msra.mxu0 %v52_v21 }
  0x1d   :  { %135 = vmatprep.subr.bf16.mxu0 %v168_v3 }
  0x20   :  { %136 = vmatpush3.bf16.msra.mxu0 %v53_v24 }
  0x23   :  { %138 = vmatmul.mubr.bf16.vlgmr.msra.gmra.mrb[0].mxu0 %v45_v26 }
  0xf6   :  { %v89_v28 = vpop.f32.mrb[0].mxu0 }
  0xf7   :  { %v95_v29 = vadd.f32 %v111_v27, %v89_v28  ;;  %v139_v30 = vpop.f32.mrb[1].mxu0 }
  0xf8   :  { %v92_v31 = vpop.f32.mrb[2].mxu0 }
  0xf9   :  { %96 = vst [vmem:[#allocation2] sm:$0xff] %v95_v29  ;;  %v140_v32 = vpop.f32.mrb[3].mxu0 }
  0xfa   :  { %155 = shalt.err (!%p152_p4)
}
  0xfb   :  { %s156_s2 = scalar_lea.hbm %s260_s3, 128 }
  0xfc   :  { %p157_p5 = scmp.ne.s32.totalorder %s260_s3, %s156_s2  ;;  %p160_p6 = scmp.lt.u32.totalorder %s156_s2, %s260_s3 }
  0xfe   :  { %p162_p7 = pnand %p160_p6, %p157_p5 }
 0x100   :  { %165 = shalt.err (!%p162_p7)
}
 0x101   :  { %106 = dma.vmem_to_hbm [thread:$0]  %s104_s22, 128, %s260_s3, [#allocation3]  }
 0x102   :  { %166 = dma.done.wait [#allocation3], 128  }
 0x103   :  { %167 = vsyncadd [#allocation3], 4294967168 }
 0x104   :  { %110 = vsyncpa [#allocation3], 1 }

</bundles_post_ra>
